<compile_context>
chip_gen: v7x
topology: tpu7x:2x2x1
jax: 0.10.0
libtpu: 0.0.40
codegen_flags: <defaults>
</compile_context>

<pallas_src>
import math

import jax
import jax.numpy as jnp
import numpy as np
from jax.experimental import pallas as pl
from jax.experimental.pallas import tpu as pltpu


def _make_opening_loss_kernel(h: int, w: int):
    """Kernel over a packed (B_g*H, K*W) slab; emits one f32 partial SSE per block."""

    def kernel(x_ref, out_ref):
        x = x_ref[...].astype(jnp.float32)           # cast in-kernel (input may be bf16)
        R, C = x.shape                                # R = B_g*H (sublanes), C = K*W (lanes)

        # Narrow boundary masks (R and C elements, not R*C).
        row = jax.lax.broadcasted_iota(jnp.int32, (R, 1), 0)
        col = jax.lax.broadcasted_iota(jnp.int32, (1, C), 1)
        top = (row % h) == 0
        bot = (row % h) == h - 1
        left = (col % w) == 0
        right = (col % w) == w - 1

        # --- grey erosion, flat 2x2 SE (scipy size=2): min over offsets {-1, 0} per axis.
        # 'reflect' boundary == edge clamp for a 1-pixel shift; image boundaries inside
        # the packed slab are fixed with the mod-based masks above.
        x_up = pltpu.roll(x, shift=1, axis=0)         # row r <- x[r-1] (circular)
        x_up = jnp.where(top, x, x_up)
        m = jnp.minimum(x, x_up)
        m_l = pltpu.roll(m, shift=1, axis=1)          # col c <- m[:, c-1]
        m_l = jnp.where(left, m, m_l)
        ero = jnp.minimum(m, m_l)

        # --- grey dilation with reflected SE: max over offsets {0, +1} per axis.
        e_dn = pltpu.roll(ero, shift=R - 1, axis=0)   # row r <- ero[r+1]
        e_dn = jnp.where(bot, ero, e_dn)
        d = jnp.maximum(ero, e_dn)
        d_r = pltpu.roll(d, shift=C - 1, axis=1)      # col c <- d[:, c+1]
        d_r = jnp.where(right, d, d_r)
        opened = jnp.maximum(d, d_r)

        # --- per-block partial squared error (blocks are independent -> "parallel").
        diff = x - opened
        out_ref[...] = jnp.sum(diff * diff, keepdims=True)

    return kernel


def opening_loss_2d(labels: jax.Array, radius: int = 2) -> jax.Array:
    """MSE between `labels` (N, C, H, W) and their channel-wise grey opening."""
    # TODO(synk): only radius=2 (scipy size=2 flat 2x2 structuring element, the module
    # default) is implemented in-kernel; other radii need a different window/footprint.
    assert radius == 2, "only radius=2 implemented"
    n, c, h, w = labels.shape
    nc = n * c
    x = labels.reshape(nc, h, w)                      # keep original dtype; cast in-kernel
    itemsize = x.dtype.itemsize

    # ---- lane packing: K images side-by-side so the lane dim is >= 128 where possible.
    k = 1 if w >= 128 else -(-128 // w)               # ceil(128 / w)
    k = max(1, min(k, nc))
    wp = k * w                                        # packed lane width

    # ---- sublane batching: B_g groups (of k images each) per grid step, ~1 MiB tiles.
    g = -(-nc // k)                                   # number of groups (before padding)
    rows_target = max(h, (1 << 20) // max(1, wp * itemsize))
    bg = max(1, rows_target // h)
    bg = min(bg, g)                                   # don't pad lots of zero groups
    sub_mult = 8 * max(1, 4 // itemsize)              # 8 for f32, 16 for bf16, 32 for int8
    m_div = sub_mult // math.gcd(h, sub_mult)         # ensure (bg*h) % sub_mult == 0
    bg = ((bg + m_div - 1) // m_div) * m_div
    num_blocks = -(-g // bg)
    g_pad = num_blocks * bg

    # ---- pad with zero images (constant images have opening == input -> 0 extra SSE),
    # then repack to a lane-dense 2D slab: (g_pad*h, k*w).
    nc_pad = g_pad * k
    xp = jnp.pad(x, ((0, nc_pad - nc), (0, 0), (0, 0)))
    if k == 1:
        xp = xp.reshape(g_pad * h, wp)                # free reshape (contiguous)
    else:
        xp = xp.reshape(g_pad, k, h, w).transpose(0, 2, 1, 3).reshape(g_pad * h, wp)

    rows_per_block = bg * h
    tile_in_bytes = rows_per_block * wp * itemsize
    tile_f32_bytes = rows_per_block * wp * 4
    # Rough in-flight VMEM: double-buffered input + a few live f32 temporaries.
    vmem_needed = 2 * tile_in_bytes + 6 * tile_f32_bytes
    vmem_limit = None
    if vmem_needed > 32 * 1024 * 1024:
        vmem_limit = int(min(vmem_needed, 100 * 1024 * 1024))

    cost = pl.CostEstimate(
        flops=14 * int(xp.size),
        transcendentals=0,
        bytes_accessed=int(xp.size) * itemsize + num_blocks * 4,
    )

    partials = pl.pallas_call(
        _make_opening_loss_kernel(h, w),
        out_shape=jax.ShapeDtypeStruct((num_blocks, 1), jnp.float32),
        grid_spec=pltpu.PrefetchScalarGridSpec(
            num_scalar_prefetch=0,
            grid=(num_blocks,),
            in_specs=[pl.BlockSpec((rows_per_block, wp), lambda i: (i, 0))],
            out_specs=pl.BlockSpec((1, 1), lambda i: (i, 0)),
        ),
        compiler_params=pltpu.CompilerParams(
            dimension_semantics=("parallel",),
            vmem_limit_bytes=vmem_limit,
        ),
        cost_estimate=cost,
    )(xp)

    return jnp.sum(partials) / (n * c * h * w)


# ---------------- pure-numpy reference (matches scipy grey_opening(img, 2)) -------------
def _grey_opening_2x2_ref(img: np.ndarray) -> np.ndarray:
    H, W = img.shape
    p = np.pad(img, ((1, 0), (1, 0)), mode="edge")
    ero = np.minimum.reduce(
        [p[0:H, 0:W], p[0:H, 1:W + 1], p[1:H + 1, 0:W], p[1:H + 1, 1:W + 1]]
    )
    q = np.pad(ero, ((0, 1), (0, 1)), mode="edge")
    opn = np.maximum.reduce(
        [q[0:H, 0:W], q[0:H, 1:W + 1], q[1:H + 1, 0:W], q[1:H + 1, 1:W + 1]]
    )
    return opn


if __name__ == "__main__":
    key = jax.random.PRNGKey(0)
    labels = jax.random.uniform(key, (2, 4, 16, 16), dtype=jnp.float32)

    loss = jax.block_until_ready(opening_loss_2d(labels))

    lab_np = np.asarray(labels)
    opened = np.stack(
        [
            np.stack([_grey_opening_2x2_ref(lab_np[i, j]) for j in range(lab_np.shape[1])])
            for i in range(lab_np.shape[0])
        ]
    )
    ref = float(np.mean((lab_np - opened) ** 2))
    assert np.allclose(float(loss), ref, rtol=1e-5, atol=1e-6), (float(loss), ref)
    print("KERNEL_OK")
</pallas_src>

<mosaic_0001>
module attributes {stable_mosaic.version = 11 : i64} {
  func.func @kernel(%arg0: i32, %arg1: memref<16x128xf32, #tpu.memory_space<vmem>>, %arg2: memref<1x1xf32, #tpu.memory_space<vmem>>) attributes {dimension_semantics = [#tpu.dimension_semantics<parallel>], iteration_bounds = array<i64: 1>, scalar_prefetch = 0 : i64, scratch_operands = 0 : i64, tpu.core_type = #tpu.core_type<tc>, window_params = [{transform_indices = @transform_0, window_bounds = array<i64: 16, 128>}, {transform_indices = @transform_1, window_bounds = array<i64: 1, 1>}]} {
    %c0 = arith.constant 0 : index
    %c0_0 = arith.constant 0 : index
    %0 = vector.load %arg1[%c0, %c0_0] : memref<16x128xf32, #tpu.memory_space<vmem>>, vector<16x128xf32>
    %1 = tpu.iota {dimensions = array<i32: 0>} : vector<16x1xi32>
    %2 = tpu.iota {dimensions = array<i32: 1>} : vector<1x128xi32>
    %c16_i32 = arith.constant 16 : i32
    %c0_i32 = arith.constant 0 : i32
    %3 = arith.cmpi eq, %c16_i32, %c0_i32 : i32
    %c1_i32 = arith.constant 1 : i32
    %4 = arith.select %3, %c1_i32, %c16_i32 : i32
    %5 = vector.broadcast %4 : i32 to vector<16x1xi32>
    %6 = arith.remsi %1, %5 : vector<16x1xi32>
    %c0_i32_1 = arith.constant 0 : i32
    %7 = vector.broadcast %c0_i32_1 : i32 to vector<16x1xi32>
    %8 = arith.cmpi ne, %6, %7 : vector<16x1xi32>
    %c0_i32_2 = arith.constant 0 : i32
    %9 = vector.broadcast %c0_i32_2 : i32 to vector<16x1xi32>
    %10 = arith.cmpi slt, %6, %9 : vector<16x1xi32>
    %c0_i32_3 = arith.constant 0 : i32
    %11 = arith.cmpi slt, %4, %c0_i32_3 : i32
    %12 = vector.broadcast %11 : i1 to vector<16x1xi1>
    %13 = vector.broadcast %12 : vector<16x1xi1> to vector<16x1xi1>
    %14 = arith.xori %10, %13 : vector<16x1xi1>
    %15 = arith.andi %14, %8 : vector<16x1xi1>
    %16 = vector.broadcast %4 : i32 to vector<16x1xi32>
    %17 = arith.addi %6, %16 : vector<16x1xi32>
    %18 = arith.select %15, %17, %6 : vector<16x1xi1>, vector<16x1xi32>
    %c0_i32_4 = arith.constant 0 : i32
    %19 = vector.broadcast %c0_i32_4 : i32 to vector<16x1xi32>
    %20 = arith.cmpi eq, %18, %19 : vector<16x1xi32>
    %c16_i32_5 = arith.constant 16 : i32
    %c0_i32_6 = arith.constant 0 : i32
    %21 = arith.cmpi eq, %c16_i32_5, %c0_i32_6 : i32
    %c1_i32_7 = arith.constant 1 : i32
    %22 = arith.select %21, %c1_i32_7, %c16_i32_5 : i32
    %23 = vector.broadcast %22 : i32 to vector<16x1xi32>
    %24 = arith.remsi %1, %23 : vector<16x1xi32>
    %c0_i32_8 = arith.constant 0 : i32
    %25 = vector.broadcast %c0_i32_8 : i32 to vector<16x1xi32>
    %26 = arith.cmpi ne, %24, %25 : vector<16x1xi32>
    %c0_i32_9 = arith.constant 0 : i32
    %27 = vector.broadcast %c0_i32_9 : i32 to vector<16x1xi32>
    %28 = arith.cmpi slt, %24, %27 : vector<16x1xi32>
    %c0_i32_10 = arith.constant 0 : i32
    %29 = arith.cmpi slt, %22, %c0_i32_10 : i32
    %30 = vector.broadcast %29 : i1 to vector<16x1xi1>
    %31 = vector.broadcast %30 : vector<16x1xi1> to vector<16x1xi1>
    %32 = arith.xori %28, %31 : vector<16x1xi1>
    %33 = arith.andi %32, %26 : vector<16x1xi1>
    %34 = vector.broadcast %22 : i32 to vector<16x1xi32>
    %35 = arith.addi %24, %34 : vector<16x1xi32>
    %36 = arith.select %33, %35, %24 : vector<16x1xi1>, vector<16x1xi32>
    %c15_i32 = arith.constant 15 : i32
    %37 = vector.broadcast %c15_i32 : i32 to vector<16x1xi32>
    %38 = arith.cmpi eq, %36, %37 : vector<16x1xi32>
    %c16_i32_11 = arith.constant 16 : i32
    %c0_i32_12 = arith.constant 0 : i32
    %39 = arith.cmpi eq, %c16_i32_11, %c0_i32_12 : i32
    %c1_i32_13 = arith.constant 1 : i32
    %40 = arith.select %39, %c1_i32_13, %c16_i32_11 : i32
    %41 = vector.broadcast %40 : i32 to vector<1x128xi32>
    %42 = arith.remsi %2, %41 : vector<1x128xi32>
    %c0_i32_14 = arith.constant 0 : i32
    %43 = vector.broadcast %c0_i32_14 : i32 to vector<1x128xi32>
    %44 = arith.cmpi ne, %42, %43 : vector<1x128xi32>
    %c0_i32_15 = arith.constant 0 : i32
    %45 = vector.broadcast %c0_i32_15 : i32 to vector<1x128xi32>
    %46 = arith.cmpi slt, %42, %45 : vector<1x128xi32>
    %c0_i32_16 = arith.constant 0 : i32
    %47 = arith.cmpi slt, %40, %c0_i32_16 : i32
    %48 = vector.broadcast %47 : i1 to vector<1x128xi1>
    %49 = vector.broadcast %48 : vector<1x128xi1> to vector<1x128xi1>
    %50 = arith.xori %46, %49 : vector<1x128xi1>
    %51 = arith.andi %50, %44 : vector<1x128xi1>
    %52 = vector.broadcast %40 : i32 to vector<1x128xi32>
    %53 = arith.addi %42, %52 : vector<1x128xi32>
    %54 = arith.select %51, %53, %42 : vector<1x128xi1>, vector<1x128xi32>
    %c0_i32_17 = arith.constant 0 : i32
    %55 = vector.broadcast %c0_i32_17 : i32 to vector<1x128xi32>
    %56 = arith.cmpi eq, %54, %55 : vector<1x128xi32>
    %c16_i32_18 = arith.constant 16 : i32
    %c0_i32_19 = arith.constant 0 : i32
    %57 = arith.cmpi eq, %c16_i32_18, %c0_i32_19 : i32
    %c1_i32_20 = arith.constant 1 : i32
    %58 = arith.select %57, %c1_i32_20, %c16_i32_18 : i32
    %59 = vector.broadcast %58 : i32 to vector<1x128xi32>
    %60 = arith.remsi %2, %59 : vector<1x128xi32>
    %c0_i32_21 = arith.constant 0 : i32
    %61 = vector.broadcast %c0_i32_21 : i32 to vector<1x128xi32>
    %62 = arith.cmpi ne, %60, %61 : vector<1x128xi32>
    %c0_i32_22 = arith.constant 0 : i32
    %63 = vector.broadcast %c0_i32_22 : i32 to vector<1x128xi32>
    %64 = arith.cmpi slt, %60, %63 : vector<1x128xi32>
    %c0_i32_23 = arith.constant 0 : i32
    %65 = arith.cmpi slt, %58, %c0_i32_23 : i32
    %66 = vector.broadcast %65 : i1 to vector<1x128xi1>
    %67 = vector.broadcast %66 : vector<1x128xi1> to vector<1x128xi1>
    %68 = arith.xori %64, %67 : vector<1x128xi1>
    %69 = arith.andi %68, %62 : vector<1x128xi1>
    %70 = vector.broadcast %58 : i32 to vector<1x128xi32>
    %71 = arith.addi %60, %70 : vector<1x128xi32>
    %72 = arith.select %69, %71, %60 : vector<1x128xi1>, vector<1x128xi32>
    %c15_i32_24 = arith.constant 15 : i32
    %73 = vector.broadcast %c15_i32_24 : i32 to vector<1x128xi32>
    %74 = arith.cmpi eq, %72, %73 : vector<1x128xi32>
    %c1_i32_25 = arith.constant 1 : i32
    %75 = tpu.dynamic_rotate %0 by %c1_i32_25 dim 0 : vector<16x128xf32>, i32 -> vector<16x128xf32>
    %76 = vector.shape_cast %20 : vector<16x1xi1> to vector<16x1xi1>
    %77 = vector.broadcast %76 : vector<16x1xi1> to vector<16x128xi1>
    %78 = arith.select %77, %0, %75 : vector<16x128xi1>, vector<16x128xf32>
    %79 = arith.minimumf %0, %78 : vector<16x128xf32>
    %c1_i32_26 = arith.constant 1 : i32
    %80 = tpu.dynamic_rotate %79 by %c1_i32_26 dim 1 : vector<16x128xf32>, i32 -> vector<16x128xf32>
    %81 = vector.shape_cast %56 : vector<1x128xi1> to vector<1x128xi1>
    %82 = vector.broadcast %81 : vector<1x128xi1> to vector<16x128xi1>
    %83 = arith.select %82, %79, %80 : vector<16x128xi1>, vector<16x128xf32>
    %84 = arith.minimumf %79, %83 : vector<16x128xf32>
    %c15_i32_27 = arith.constant 15 : i32
    %85 = tpu.dynamic_rotate %84 by %c15_i32_27 dim 0 : vector<16x128xf32>, i32 -> vector<16x128xf32>
    %86 = vector.shape_cast %38 : vector<16x1xi1> to vector<16x1xi1>
    %87 = vector.broadcast %86 : vector<16x1xi1> to vector<16x128xi1>
    %88 = arith.select %87, %84, %85 : vector<16x128xi1>, vector<16x128xf32>
    %89 = arith.maximumf %84, %88 : vector<16x128xf32>
    %c127_i32 = arith.constant 127 : i32
    %90 = tpu.dynamic_rotate %89 by %c127_i32 dim 1 : vector<16x128xf32>, i32 -> vector<16x128xf32>
    %91 = vector.shape_cast %74 : vector<1x128xi1> to vector<1x128xi1>
    %92 = vector.broadcast %91 : vector<1x128xi1> to vector<16x128xi1>
    %93 = arith.select %92, %89, %90 : vector<16x128xi1>, vector<16x128xf32>
    %94 = arith.maximumf %89, %93 : vector<16x128xf32>
    %95 = arith.subf %0, %94 : vector<16x128xf32>
    %96 = arith.mulf %95, %95 : vector<16x128xf32>
    %97 = vector.shape_cast %96 : vector<16x128xf32> to vector<1x16x128xf32>
    %cst = arith.constant dense<0.000000e+00> : vector<1xf32>
    %98 = vector.multi_reduction <add>, %97, %cst [1, 2] : vector<1x16x128xf32> to vector<1xf32>
    %99 = vector.shape_cast %98 : vector<1xf32> to vector<1x1x1xf32>
    %100 = vector.extract %99[0, 0, 0] : f32 from vector<1x1x1xf32>
    %101 = vector.broadcast %100 : f32 to vector<1x1xf32>
    %c0_28 = arith.constant 0 : index
    %c0_29 = arith.constant 0 : index
    %102 = vector.load %arg2[%c0_28, %c0_29] : memref<1x1xf32, #tpu.memory_space<vmem>>, vector<1x1xf32>
    tpu.vector_store %arg2[%c0_28, %c0_29], %101 {strides = array<i32>} : memref<1x1xf32, #tpu.memory_space<vmem>>, vector<1x1xf32>,
    return
  }
  func.func @transform_0(%arg0: i32) -> (i32, i32) {
    %c0_i32 = arith.constant 0 : i32
    %c0_i32_0 = arith.constant 0 : i32
    return %arg0, %c0_i32 : i32, i32
  }
  func.func @transform_1(%arg0: i32) -> (i32, i32) {
    %c0_i32 = arith.constant 0 : i32
    %c0_i32_0 = arith.constant 0 : i32
    return %arg0, %c0_i32 : i32, i32
  }
}

</mosaic_0001>

<bundles_post_ra>
// kernel: tpu_custom_call.1
= control target key start
LH: loop header
LB: loop body
LE: loop exit
PB: predicated region body
PF: predicated region fallthrough
CT: control target
= control target key end

     0   :  { %6 = vsyncpa [#allocation3], 0  ;;  %s246_s0 = inlined_call_operand.hbm [shape: f32[16,128], index: 0, kind: input, shape index: {}]   ;;  %s247_s1 = inlined_call_operand.hbm [shape: f32[1,1], index: 1, kind: output, shape index: {}]  }
   0x1   :  { %7 = vsyncpa [#allocation4], 0  ;;  %s206_s6 = smov [#allocation2]   ;;  %s158_s10 = scalar_lea.hbm %s246_s0, 256 }
   0x2   :  { %s13_s7 = sshll.u32 %s206_s6, 4  ;;  %p159_p0 = scmp.ne.s32.totalorder %s246_s0, %s158_s10  ;;  %s14_s7 = int_to_ptr.vmem [resolvable:$true] %s13_s7 }
   0x3   :  { %p162_p1 = scmp.lt.u32.totalorder %s158_s10, %s246_s0 }
   0x5   :  { %p164_p2 = pnand %p162_p1, %p159_p0 }
   0x7   :  { %167 = shalt.err (!%p164_p2)
}
   0x8   :  { %s168_s15 = scalar_lea.vmem %s14_s7, 256  ;;  %p173_p4 = scmp.lt.s32.totalorder %s14_s7, %s14_s7 }
   0x9   :  { %p169_p3 = scmp.ne.s32.totalorder %s14_s7, %s168_s15  ;;  %p174_p5 = scmp.lt.s32.totalorder %s168_s15, %s168_s15 }
   0xb   :  { %p175_p6 = por %p174_p5, %p173_p4 }
   0xd   :  { %p176_p7 = pnand %p175_p6, %p169_p3 }
   0xf   :  { %179 = shalt.err (!%p176_p7)
}
  0x10   :  { %s207_s16 = smov 128   ;;  %s208_s17 = smov 8  }
  0x11   :  { %19 = dma.hbm_to_vmem [thread:$0]  %s246_s0, 256, %s14_s7, [#allocation3], %s207_s16, %s207_s16, %s208_s17  }
  0x12   :  { %202 = dma.done.wait [#allocation3], 256  }
  0x13   :  { %203 = vsyncadd [#allocation3], 4294967040  ;;  %v25_v0 = vlaneseq  ;;  %v23_v3 = vld [vmem:[#allocation2] sm:$0xff]  ;;  %v24_v4 = vld [vmem:[#allocation2 + $0x8] sm:$0xff]  ;;  %s209_s20 = smov 1   ;;  %s210_s0 = smov 127  }
  0x14   :  { %v72_v5 = vrot.slane %v23_v3, 7  ;;  %v73_v6 = vrot.slane %v24_v4, 7  ;;  %s211_s21 = smov [#allocation5]   ;;  %vm133_vm6 = vcmask 0  }
  0x15   :  { %v26_v1 = vshrl.u32 %v25_v0, 7  ;;  %v29_v12 = vand.u32 127, %v25_v0  ;;  %s141_s22 = sshll.u32 %s211_s21, 4  ;;  %s142_s22 = int_to_ptr.vmem [resolvable:$true] %s141_s22 }
  0x16   :  { %s180_s24 = scalar_lea.vmem %s142_s22, 16  ;;  %s184_s25 = scalar_lea.vmem %s142_s22, 32 }
  0x17   :  { %v34_v2 = vand.u32 15, %v26_v1  ;;  %vm74_vm0 = vcmp.lt.s32.totalorder %v26_v1, 1  ;;  %v62_v13 = vand.u32 15, %v29_v12  ;;  %v27_v15 = vadd.s32 8, %v26_v1  ;;  %p181_p8 = scmp.ne.s32.totalorder %s142_s22, %s180_s24  ;;  %p185_p9 = scmp.lt.s32.totalorder %s142_s22, %s142_s22 }
  0x18   :  { %v76_v7 = vsel %vm74_vm0, %v73_v6, %v72_v5  ;;  %v75_v9 = vsel %vm74_vm0, %v72_v5, %v73_v6  ;;  %vm97_vm3 = vcmp.lt.s32.totalorder %v26_v1, 7  ;;  %p186_p10 = scmp.lt.s32.totalorder %s184_s25, %s180_s24 }
  0x19   :  { %vm54_vm1 = vcmp.eq.s32.totalorder %v34_v2, 0  ;;  %v84_v11 = vmin.f32 %v24_v4, %v75_v9  ;;  %vm70_vm2 = vcmp.eq.s32.totalorder %v62_v13, 0  ;;  %v41_v19 = vand.u32 15, %v27_v15 }
  0x1a   :  { %v81_v8 = vsel %vm54_vm1, %v23_v3, %v76_v7  ;;  %vm71_vm5 = vcmp.eq.s32.totalorder %v62_v13, 15  ;;  %p187_p11 = por %p186_p10, %p185_p9 }
  0x1b   :  { %v83_v10 = vmin.f32 %v23_v3, %v81_v8  ;;  %vm57_vm4 = vcmp.eq.s32.totalorder %v41_v19, 15 }
  0x1c   :  { %p188_p12 = pnand %p187_p11, %p181_p8 }
  0x1d   :  { %85 = vrot.lane.b32.xlu0 %v83_v10, %s209_s20 }
  0x21   :  { %87 = vrot.lane.b32.xlu0 %v84_v11, %s209_s20 }
  0x8f   :  { %v86_v14 = vpop.permute.xlu0 %85 }
  0x90   :  { %v91_v16 = vsel %vm70_vm2, %v83_v10, %v86_v14 }
  0x91   :  { %v93_v17 = vmin.f32 %v83_v10, %v91_v16 }
  0x93   :  { %v88_v18 = vpop.permute.xlu0 %87  ;;  %v95_v22 = vrot.slane %v93_v17, 1 }
  0x94   :  { %v92_v20 = vsel %vm70_vm2, %v84_v11, %v88_v18 }
  0x95   :  { %v94_v21 = vmin.f32 %v84_v11, %v92_v20 }
  0x97   :  { %v96_v23 = vrot.slane %v94_v21, 1 }
  0x99   :  { %v98_v24 = vsel %vm97_vm3, %v95_v22, %v96_v23  ;;  %v99_v25 = vsel %vm97_vm3, %v96_v23, %v95_v22 }
  0x9a   :  { %v106_v26 = vmax.f32 %v93_v17, %v98_v24  ;;  %v105_v27 = vsel %vm57_vm4, %v94_v21, %v99_v25 }
  0x9b   :  { %v107_v28 = vmax.f32 %v94_v21, %v105_v27 }
  0x9c   :  { %108 = vrot.lane.b32.xlu1 %v106_v26, %s210_s0 }
  0xa0   :  { %110 = vrot.lane.b32.xlu1 %v107_v28, %s210_s0 }
 0x10e   :  { %v109_v29 = vpop.permute.xlu1 %108 }
 0x10f   :  { %v114_v30 = vsel %vm71_vm5, %v106_v26, %v109_v29 }
 0x110   :  { %v116_v31 = vmax.f32 %v106_v26, %v114_v30 }
 0x112   :  { %v111_v32 = vpop.permute.xlu1 %110  ;;  %v118_v35 = vsub.f32 %v23_v3, %v116_v31 }
 0x113   :  { %v115_v33 = vsel %vm71_vm5, %v107_v28, %v111_v32 }
 0x114   :  { %v117_v34 = vmax.f32 %v107_v28, %v115_v33  ;;  %v120_v37 = vmul.f32 %v118_v35, %v118_v35 }
 0x116   :  { %v119_v36 = vsub.f32 %v24_v4, %v117_v34 }
 0x118   :  { %v121_v38 = vmul.f32 %v119_v36, %v119_v36 }
 0x11a   :  { %v122_v39 = vadd.f32 %v121_v38, %v120_v37 }
 0x11c   :  { %123 = vadd.xlane.f32.xlu0 %v122_v39 }
 0x1a9   :  { %v124_v40 = vpop.xlane.xlu0 %123 }
 0x1aa   :  { %v125_v41 = vrot.slane %v124_v40, 4 }
 0x1ac   :  { %v126_v42 = vadd.f32 %v125_v41, %v124_v40 }
 0x1ae   :  { %v127_v43 = vrot.slane %v126_v42, 2 }
 0x1b0   :  { %v128_v44 = vadd.f32 %v127_v43, %v126_v42 }
 0x1b2   :  { %v129_v45 = vrot.slane %v128_v44, 1 }
 0x1b4   :  { %v130_v46 = vadd.f32 %v129_v45, %v128_v44 }
 0x1b6   :  { %150 = vpush %v130_v46 }
 0x1e7   :  { %s151_s23 = spop %150 }
 0x1e8   :  { %v132_v47 = vstv %s151_s23 }
 0x1e9   :  { %134 = vst.msk [vmem:[#allocation5] sm:$0x1] %vm133_vm6, %v132_v47 }
 0x1ea   :  { %191 = shalt.err (!%p188_p12)
}
 0x1eb   :  { %s192_s28 = scalar_lea.hbm %s247_s1, 16 }
 0x1ec   :  { %p193_p13 = scmp.ne.s32.totalorder %s247_s1, %s192_s28  ;;  %p196_p0 = scmp.lt.u32.totalorder %s192_s28, %s247_s1 }
 0x1ee   :  { %p198_p1 = pnand %p196_p0, %p193_p13 }
 0x1f0   :  { %201 = shalt.err (!%p198_p1)
}
 0x1f1   :  { %144 = dma.vmem_to_hbm [thread:$0]  %s142_s22, 16, %s247_s1, [#allocation4]  }
 0x1f2   :  { %204 = dma.done.wait [#allocation4], 16  }
 0x1f3   :  { %205 = vsyncadd [#allocation4], 4294967280 }
 0x1f4   :  { %148 = vsyncpa [#allocation3], 1 }
 0x1f5   :  { %149 = vsyncpa [#allocation4], 1 }

</bundles_post_ra>
